<compile_context>
chip_gen: v7x
topology: tpu7x:2x2x1
jax: 0.10.0
libtpu: 0.0.40
codegen_flags: <defaults>
</compile_context>

<pallas_src>
import jax
import jax.numpy as jnp
from jax.experimental import pallas as pl
from jax.experimental.pallas import tpu as pltpu

LN_EPS = 1e-5


def _round_up(x, m):
    return ((x + m - 1) // m) * m


def _layer_norm(h):
    """LayerNorm over the last dim with biased variance (matches torch), f32 stats.
    The gamma/beta affine is folded into the following linear layer in the wrapper."""
    n = h.shape[-1]
    inv_n = 1.0 / n
    mean = jnp.sum(h, axis=-1, keepdims=True) * inv_n
    hc = h - mean                                    # computed once, reused below
    var = jnp.sum(hc * hc, axis=-1, keepdims=True) * inv_n
    return hc * jax.lax.rsqrt(var + LN_EPS)


def _q_net_kernel(s_ref, a_ref,
                  w1s_ref, w1a_ref, b1_ref,
                  w2_ref, b2_ref,
                  w3_ref, b3_ref,
                  out_ref):
    mm_dtype = w1s_ref.dtype           # f32 or bf16; inputs are pre-cast in the wrapper

    # ---- block 1: Linear(concat) -> ReLU -> LayerNorm (affine folded into W2/b2) ----
    # concat([s, a]) @ W1 == s @ W1s + a @ W1a  (split-matmul, no concat needed)
    h = (jnp.dot(s_ref[...], w1s_ref[...], preferred_element_type=jnp.float32)
         + jnp.dot(a_ref[...], w1a_ref[...], preferred_element_type=jnp.float32)
         + b1_ref[...])
    h = jnp.maximum(h, 0.0)
    h = _layer_norm(h)

    # ---- block 2: Linear -> ReLU -> LayerNorm (affine folded into w3/b3) ----
    h = (jnp.dot(h.astype(mm_dtype), w2_ref[...], preferred_element_type=jnp.float32)
         + b2_ref[...])
    h = jnp.maximum(h, 0.0)
    h = _layer_norm(h)

    # ---- head: Linear(H2, 1) as VPU multiply + lane reduction (skip a 1-col MXU matmul)
    v = jnp.sum(h * w3_ref[...], axis=-1, keepdims=True) + b3_ref[...]
    out_ref[...] = v.astype(out_ref.dtype)


def qnetwork_forward(state, action, params, *, matmul_dtype=jnp.float32, tile_b=2048):
    """state: (B, state_dim) f32, action: (B, action_dim) f32.  Returns (B, 1) f32.

    matmul_dtype: jnp.float32 for exact module semantics; jnp.bfloat16 is recommended
    on ALL generations (v5e/v6e/v7x MXUs are bf16-native; f32 matmul is emulated).
    Accumulation and LayerNorm statistics stay f32 either way.
    """
    (w1s, w1a, b1, g1, be1, w2, b2, g2, be2, w3, b3) = params
    B, state_dim = state.shape
    action_dim = action.shape[1]
    H1 = w1s.shape[1]
    H2 = w2.shape[1]

    # ---- fold LayerNorm affine transforms into the following linear layers (f32) ----
    #   ln_out @ W2 + b2 == (hc_norm * g1 + be1) @ W2 + b2
    #                    == hc_norm @ (diag(g1) @ W2) + (be1 @ W2 + b2)
    b2_f = b2 + be1 @ w2                             # uses the ORIGINAL W2
    w2_f = g1.reshape(-1, 1) * w2                    # diag(g1) @ W2
    b3_f = b3 + jnp.sum(be2 * w3, axis=-1, keepdims=True)   # uses the ORIGINAL w3 row
    w3_f = g2 * w3                                   # (1, H2) elementwise

    # ---- batch tiling ----
    tile_b = max(8, _round_up(int(tile_b), 8))
    if B <= tile_b:
        if B >= 16:
            # Split into >= 2 tiles so the "parallel" batch axis can shard across
            # v7x's two TensorCores; costs one ~0.35us extra grid step on 1-TC chips.
            TILE_B = _round_up((B + 1) // 2, 8)
        else:
            TILE_B = max(8, _round_up(B, 8))
    else:
        TILE_B = tile_b
    B_pad = _round_up(B, TILE_B)
    if B_pad != B:
        pad = ((0, B_pad - B), (0, 0))
        state = jnp.pad(state, pad)
        action = jnp.pad(action, pad)
    num_tiles = B_pad // TILE_B

    # ---- matmul operand dtypes ----
    # Cast the streamed activations in the wrapper: halves the only O(B) HBM traffic
    # on the bf16 path and removes in-kernel f32->bf16 pack ops.
    state_c = state.astype(matmul_dtype)
    action_c = action.astype(matmul_dtype)
    w1s_c = w1s.astype(matmul_dtype)
    w1a_c = w1a.astype(matmul_dtype)
    w2_c = w2_f.astype(matmul_dtype)
    # b1/b2_f/w3_f/b3_f stay f32 (f32 accumulate + VPU head).

    def const_spec(arr):
        # Full-array block, constant index map -> stays resident, no re-DMA per step.
        return pl.BlockSpec(arr.shape, lambda i: (0, 0))

    grid_spec = pltpu.PrefetchScalarGridSpec(
        num_scalar_prefetch=0,
        grid=(num_tiles,),
        in_specs=[
            pl.BlockSpec((TILE_B, state_dim), lambda i: (i, 0)),
            pl.BlockSpec((TILE_B, action_dim), lambda i: (i, 0)),
            const_spec(w1s_c), const_spec(w1a_c), const_spec(b1),
            const_spec(w2_c), const_spec(b2_f),
            const_spec(w3_f), const_spec(b3_f),
        ],
        out_specs=pl.BlockSpec((TILE_B, 1), lambda i: (i, 0)),
    )

    param_bytes = sum(int(p.size) * p.dtype.itemsize
                      for p in (w1s_c, w1a_c, b1, w2_c, b2_f, w3_f, b3_f))
    flops = (2 * B_pad * ((state_dim + action_dim) * H1 + H1 * H2 + H2)
             + 8 * B_pad * (H1 + H2))
    bytes_accessed = (B_pad * (state_dim + action_dim) * state_c.dtype.itemsize
                      + param_bytes + B_pad * 4)
    cost = pl.CostEstimate(flops=int(flops),
                           transcendentals=int(2 * B_pad),
                           bytes_accessed=int(bytes_accessed))

    out = pl.pallas_call(
        _q_net_kernel,
        out_shape=jax.ShapeDtypeStruct((B_pad, 1), jnp.float32),
        grid_spec=grid_spec,
        compiler_params=pltpu.CompilerParams(
            dimension_semantics=("parallel",),   # batch tiles shard across v7x's 2 TCs
        ),
        cost_estimate=cost,
    )(state_c, action_c, w1s_c, w1a_c, b1, w2_c, b2_f, w3_f, b3_f)

    return out[:B]


# ----------------------------- init & reference -----------------------------

def _xavier_uniform(key, fan_in, fan_out):
    bound = (6.0 / (fan_in + fan_out)) ** 0.5
    return jax.random.uniform(key, (fan_in, fan_out),
                              minval=-bound, maxval=bound, dtype=jnp.float32)


def init_params(key, state_dim, action_dim, hidden_dims):
    """Matches the PyTorch module: xavier_uniform Linear weights, zero biases,
    LayerNorm gamma=1 / beta=0.  First Linear weight is split into state/action halves."""
    assert len(hidden_dims) == 2, "kernel is specialized to two hidden blocks"
    H1, H2 = hidden_dims
    k1, k2, k3 = jax.random.split(key, 3)

    in1 = state_dim + action_dim
    w1 = _xavier_uniform(k1, in1, H1)
    w1s, w1a = w1[:state_dim], w1[state_dim:]
    b1 = jnp.zeros((1, H1), jnp.float32)
    g1 = jnp.ones((1, H1), jnp.float32)
    be1 = jnp.zeros((1, H1), jnp.float32)

    w2 = _xavier_uniform(k2, H1, H2)
    b2 = jnp.zeros((1, H2), jnp.float32)
    g2 = jnp.ones((1, H2), jnp.float32)
    be2 = jnp.zeros((1, H2), jnp.float32)

    w3 = _xavier_uniform(k3, H2, 1).T          # stored as a (1, H2) row for the VPU head
    b3 = jnp.zeros((1, 1), jnp.float32)

    return (w1s, w1a, b1, g1, be1, w2, b2, g2, be2, w3, b3)


def reference_forward(state, action, params):
    """Plain-JAX reference mirroring the PyTorch module (no folding)."""
    (w1s, w1a, b1, g1, be1, w2, b2, g2, be2, w3, b3) = params
    x = jnp.concatenate([state, action], axis=-1)
    w1 = jnp.concatenate([w1s, w1a], axis=0)

    def block(x, w, b, g, be):
        h = jnp.maximum(x @ w + b, 0.0)
        mean = jnp.mean(h, axis=-1, keepdims=True)
        var = jnp.mean((h - mean) ** 2, axis=-1, keepdims=True)
        return (h - mean) / jnp.sqrt(var + LN_EPS) * g + be

    h = block(x, w1, b1, g1, be1)
    h = block(h, w2, b2, g2, be2)
    return h @ w3.T + b3


if __name__ == "__main__":
    key = jax.random.PRNGKey(0)
    k_param, k_state, k_action, k_g1, k_b1, k_g2, k_b2 = jax.random.split(key, 7)

    batch = 20
    state_dim = 24
    action_dim = 8
    hidden_dims = [128, 128]

    params = init_params(k_param, state_dim, action_dim, hidden_dims)

    # Perturb LayerNorm gamma/beta away from (1, 0) so the affine-folding path is
    # actually exercised (the PyTorch init leaves them trivial).
    (w1s, w1a, b1, g1, be1, w2, b2, g2, be2, w3, b3) = params
    g1 = g1 + 0.1 * jax.random.normal(k_g1, g1.shape, jnp.float32)
    be1 = be1 + 0.1 * jax.random.normal(k_b1, be1.shape, jnp.float32)
    g2 = g2 + 0.1 * jax.random.normal(k_g2, g2.shape, jnp.float32)
    be2 = be2 + 0.1 * jax.random.normal(k_b2, be2.shape, jnp.float32)
    params = (w1s, w1a, b1, g1, be1, w2, b2, g2, be2, w3, b3)

    state = jax.random.normal(k_state, (batch, state_dim), dtype=jnp.float32)
    action = jax.random.normal(k_action, (batch, action_dim), dtype=jnp.float32)

    ref = reference_forward(state, action, params)

    # f32 path, small tile to force a multi-step batch grid with padding.
    out = qnetwork_forward(state, action, params, matmul_dtype=jnp.float32, tile_b=8)
    out = jax.block_until_ready(out)
    assert out.shape == (batch, 1)
    assert jnp.allclose(out, ref, atol=5e-4, rtol=5e-4), "f32 kernel (tiled) mismatch vs reference"

    # f32 path, default tile_b: exercises the min-2-tiles (v7x megacore) split.
    out_d = qnetwork_forward(state, action, params, matmul_dtype=jnp.float32)
    out_d = jax.block_until_ready(out_d)
    assert jnp.allclose(out_d, ref, atol=5e-4, rtol=5e-4), "f32 kernel (default tile) mismatch"

    # bf16 matmul-operand path (MXU-native on all generations); f32 accumulation + f32 LN.
    out_bf16 = qnetwork_forward(state, action, params, matmul_dtype=jnp.bfloat16, tile_b=8)
    out_bf16 = jax.block_until_ready(out_bf16)
    assert out_bf16.shape == (batch, 1)
    assert jnp.allclose(out_bf16, ref, atol=1e-1, rtol=1e-1), "bf16 kernel mismatch vs reference"

    print("KERNEL_OK")
</pallas_src>

<mosaic_0001>
module attributes {stable_mosaic.version = 11 : i64} {
  func.func @_q_net_kernel(%arg0: i32, %arg1: memref<8x24xf32, #tpu.memory_space<vmem>>, %arg2: memref<8x8xf32, #tpu.memory_space<vmem>>, %arg3: memref<24x128xf32, #tpu.memory_space<vmem>>, %arg4: memref<8x128xf32, #tpu.memory_space<vmem>>, %arg5: memref<1x128xf32, #tpu.memory_space<vmem>>, %arg6: memref<128x128xf32, #tpu.memory_space<vmem>>, %arg7: memref<1x128xf32, #tpu.memory_space<vmem>>, %arg8: memref<1x128xf32, #tpu.memory_space<vmem>>, %arg9: memref<1x1xf32, #tpu.memory_space<vmem>>, %arg10: memref<8x1xf32, #tpu.memory_space<vmem>>) attributes {dimension_semantics = [#tpu.dimension_semantics<parallel>], iteration_bounds = array<i64: 3>, scalar_prefetch = 0 : i64, scratch_operands = 0 : i64, tpu.core_type = #tpu.core_type<tc>, window_params = [{transform_indices = @transform_0, window_bounds = array<i64: 8, 24>}, {transform_indices = @transform_1, window_bounds = array<i64: 8, 8>}, {pipeline_mode = #tpu.pipeline_mode<synchronous>, transform_indices = @transform_2, window_bounds = array<i64: 24, 128>}, {pipeline_mode = #tpu.pipeline_mode<synchronous>, transform_indices = @transform_3, window_bounds = array<i64: 8, 128>}, {pipeline_mode = #tpu.pipeline_mode<synchronous>, transform_indices = @transform_4, window_bounds = array<i64: 1, 128>}, {pipeline_mode = #tpu.pipeline_mode<synchronous>, transform_indices = @transform_5, window_bounds = array<i64: 128, 128>}, {pipeline_mode = #tpu.pipeline_mode<synchronous>, transform_indices = @transform_6, window_bounds = array<i64: 1, 128>}, {pipeline_mode = #tpu.pipeline_mode<synchronous>, transform_indices = @transform_7, window_bounds = array<i64: 1, 128>}, {pipeline_mode = #tpu.pipeline_mode<synchronous>, transform_indices = @transform_8, window_bounds = array<i64: 1, 1>}, {transform_indices = @transform_9, window_bounds = array<i64: 8, 1>}]} {
    %c0 = arith.constant 0 : index
    %c0_0 = arith.constant 0 : index
    %0 = vector.load %arg1[%c0, %c0_0] : memref<8x24xf32, #tpu.memory_space<vmem>>, vector<8x24xf32>
    %c0_1 = arith.constant 0 : index
    %c0_2 = arith.constant 0 : index
    %1 = vector.load %arg3[%c0_1, %c0_2] : memref<24x128xf32, #tpu.memory_space<vmem>>, vector<24x128xf32>
    %cst = arith.constant dense<0.000000e+00> : vector<8x128xf32>
    %2 = tpu.matmul %0, %1, %cst {dimension_numbers = #tpu.dot_dimension_numbers<[1], [0], [0], [1], [0, 0, 1, 1], [], []>} : vector<8x24xf32>, vector<24x128xf32>, vector<8x128xf32> -> vector<8x128xf32>
    %c0_3 = arith.constant 0 : index
    %c0_4 = arith.constant 0 : index
    %3 = vector.load %arg2[%c0_3, %c0_4] : memref<8x8xf32, #tpu.memory_space<vmem>>, vector<8x8xf32>
    %c0_5 = arith.constant 0 : index
    %c0_6 = arith.constant 0 : index
    %4 = vector.load %arg4[%c0_5, %c0_6] : memref<8x128xf32, #tpu.memory_space<vmem>>, vector<8x128xf32>
    %cst_7 = arith.constant dense<0.000000e+00> : vector<8x128xf32>
    %5 = tpu.matmul %3, %4, %cst_7 {dimension_numbers = #tpu.dot_dimension_numbers<[1], [0], [0], [1], [0, 0, 1, 1], [], []>} : vector<8x8xf32>, vector<8x128xf32>, vector<8x128xf32> -> vector<8x128xf32>
    %6 = arith.addf %2, %5 : vector<8x128xf32>
    %c0_8 = arith.constant 0 : index
    %c0_9 = arith.constant 0 : index
    %7 = vector.load %arg5[%c0_8, %c0_9] : memref<1x128xf32, #tpu.memory_space<vmem>>, vector<1x128xf32>
    %8 = vector.broadcast %7 : vector<1x128xf32> to vector<8x128xf32>
    %9 = arith.addf %6, %8 : vector<8x128xf32>
    %cst_10 = arith.constant 0.000000e+00 : f32
    %10 = vector.broadcast %cst_10 : f32 to vector<8x128xf32>
    %11 = arith.maximumf %9, %10 : vector<8x128xf32>
    %cst_11 = arith.constant dense<0.000000e+00> : vector<8xf32>
    %12 = vector.multi_reduction <add>, %11, %cst_11 [1] : vector<8x128xf32> to vector<8xf32>
    %13 = vector.shape_cast %12 : vector<8xf32> to vector<8x1xf32>
    %cst_12 = arith.constant 7.812500e-03 : f32
    %14 = vector.broadcast %cst_12 : f32 to vector<8x1xf32>
    %15 = arith.mulf %13, %14 : vector<8x1xf32>
    %16 = vector.broadcast %15 : vector<8x1xf32> to vector<8x128xf32>
    %17 = arith.subf %11, %16 : vector<8x128xf32>
    %18 = arith.mulf %17, %17 : vector<8x128xf32>
    %cst_13 = arith.constant dense<0.000000e+00> : vector<8xf32>
    %19 = vector.multi_reduction <add>, %18, %cst_13 [1] : vector<8x128xf32> to vector<8xf32>
    %20 = vector.shape_cast %19 : vector<8xf32> to vector<8x1xf32>
    %cst_14 = arith.constant 7.812500e-03 : f32
    %21 = vector.broadcast %cst_14 : f32 to vector<8x1xf32>
    %22 = arith.mulf %20, %21 : vector<8x1xf32>
    %cst_15 = arith.constant 9.99999974E-6 : f32
    %23 = vector.broadcast %cst_15 : f32 to vector<8x1xf32>
    %24 = arith.addf %22, %23 : vector<8x1xf32>
    %25 = math.rsqrt %24 : vector<8x1xf32>
    %26 = vector.broadcast %25 : vector<8x1xf32> to vector<8x128xf32>
    %27 = arith.mulf %17, %26 : vector<8x128xf32>
    %c0_16 = arith.constant 0 : index
    %c0_17 = arith.constant 0 : index
    %28 = vector.load %arg6[%c0_16, %c0_17] : memref<128x128xf32, #tpu.memory_space<vmem>>, vector<128x128xf32>
    %cst_18 = arith.constant dense<0.000000e+00> : vector<8x128xf32>
    %29 = tpu.matmul %27, %28, %cst_18 {dimension_numbers = #tpu.dot_dimension_numbers<[1], [0], [0], [1], [0, 0, 1, 1], [], []>} : vector<8x128xf32>, vector<128x128xf32>, vector<8x128xf32> -> vector<8x128xf32>
    %c0_19 = arith.constant 0 : index
    %c0_20 = arith.constant 0 : index
    %30 = vector.load %arg7[%c0_19, %c0_20] : memref<1x128xf32, #tpu.memory_space<vmem>>, vector<1x128xf32>
    %31 = vector.broadcast %30 : vector<1x128xf32> to vector<8x128xf32>
    %32 = arith.addf %29, %31 : vector<8x128xf32>
    %cst_21 = arith.constant 0.000000e+00 : f32
    %33 = vector.broadcast %cst_21 : f32 to vector<8x128xf32>
    %34 = arith.maximumf %32, %33 : vector<8x128xf32>
    %cst_22 = arith.constant dense<0.000000e+00> : vector<8xf32>
    %35 = vector.multi_reduction <add>, %34, %cst_22 [1] : vector<8x128xf32> to vector<8xf32>
    %36 = vector.shape_cast %35 : vector<8xf32> to vector<8x1xf32>
    %cst_23 = arith.constant 7.812500e-03 : f32
    %37 = vector.broadcast %cst_23 : f32 to vector<8x1xf32>
    %38 = arith.mulf %36, %37 : vector<8x1xf32>
    %39 = vector.broadcast %38 : vector<8x1xf32> to vector<8x128xf32>
    %40 = arith.subf %34, %39 : vector<8x128xf32>
    %41 = arith.mulf %40, %40 : vector<8x128xf32>
    %cst_24 = arith.constant dense<0.000000e+00> : vector<8xf32>
    %42 = vector.multi_reduction <add>, %41, %cst_24 [1] : vector<8x128xf32> to vector<8xf32>
    %43 = vector.shape_cast %42 : vector<8xf32> to vector<8x1xf32>
    %cst_25 = arith.constant 7.812500e-03 : f32
    %44 = vector.broadcast %cst_25 : f32 to vector<8x1xf32>
    %45 = arith.mulf %43, %44 : vector<8x1xf32>
    %cst_26 = arith.constant 9.99999974E-6 : f32
    %46 = vector.broadcast %cst_26 : f32 to vector<8x1xf32>
    %47 = arith.addf %45, %46 : vector<8x1xf32>
    %48 = math.rsqrt %47 : vector<8x1xf32>
    %49 = vector.broadcast %48 : vector<8x1xf32> to vector<8x128xf32>
    %50 = arith.mulf %40, %49 : vector<8x128xf32>
    %c0_27 = arith.constant 0 : index
    %c0_28 = arith.constant 0 : index
    %51 = vector.load %arg8[%c0_27, %c0_28] : memref<1x128xf32, #tpu.memory_space<vmem>>, vector<1x128xf32>
    %52 = vector.broadcast %51 : vector<1x128xf32> to vector<8x128xf32>
    %53 = arith.mulf %50, %52 : vector<8x128xf32>
    %cst_29 = arith.constant dense<0.000000e+00> : vector<8xf32>
    %54 = vector.multi_reduction <add>, %53, %cst_29 [1] : vector<8x128xf32> to vector<8xf32>
    %55 = vector.shape_cast %54 : vector<8xf32> to vector<8x1xf32>
    %c0_30 = arith.constant 0 : index
    %c0_31 = arith.constant 0 : index
    %56 = vector.load %arg9[%c0_30, %c0_31] : memref<1x1xf32, #tpu.memory_space<vmem>>, vector<1x1xf32>
    %57 = vector.broadcast %56 : vector<1x1xf32> to vector<8x1xf32>
    %58 = arith.addf %55, %57 : vector<8x1xf32>
    %c0_32 = arith.constant 0 : index
    %c0_33 = arith.constant 0 : index
    %59 = vector.load %arg10[%c0_32, %c0_33] : memref<8x1xf32, #tpu.memory_space<vmem>>, vector<8x1xf32>
    tpu.vector_store %arg10[%c0_32, %c0_33], %58 {strides = array<i32>} : memref<8x1xf32, #tpu.memory_space<vmem>>, vector<8x1xf32>,
    return
  }
  func.func @transform_0(%arg0: i32) -> (i32, i32) {
    %c0_i32 = arith.constant 0 : i32
    %c0_i32_0 = arith.constant 0 : i32
    return %arg0, %c0_i32 : i32, i32
  }
  func.func @transform_1(%arg0: i32) -> (i32, i32) {
    %c0_i32 = arith.constant 0 : i32
    %c0_i32_0 = arith.constant 0 : i32
    return %arg0, %c0_i32 : i32, i32
  }
  func.func @transform_2(%arg0: i32) -> (i32, i32) {
    %c0_i32 = arith.constant 0 : i32
    %c0_i32_0 = arith.constant 0 : i32
    %c0_i32_1 = arith.constant 0 : i32
    return %c0_i32, %c0_i32_0 : i32, i32
  }
  func.func @transform_3(%arg0: i32) -> (i32, i32) {
    %c0_i32 = arith.constant 0 : i32
    %c0_i32_0 = arith.constant 0 : i32
    %c0_i32_1 = arith.constant 0 : i32
    return %c0_i32, %c0_i32_0 : i32, i32
  }
  func.func @transform_4(%arg0: i32) -> (i32, i32) {
    %c0_i32 = arith.constant 0 : i32
    %c0_i32_0 = arith.constant 0 : i32
    %c0_i32_1 = arith.constant 0 : i32
    return %c0_i32, %c0_i32_0 : i32, i32
  }
  func.func @transform_5(%arg0: i32) -> (i32, i32) {
    %c0_i32 = arith.constant 0 : i32
    %c0_i32_0 = arith.constant 0 : i32
    %c0_i32_1 = arith.constant 0 : i32
    return %c0_i32, %c0_i32_0 : i32, i32
  }
  func.func @transform_6(%arg0: i32) -> (i32, i32) {
    %c0_i32 = arith.constant 0 : i32
    %c0_i32_0 = arith.constant 0 : i32
    %c0_i32_1 = arith.constant 0 : i32
    return %c0_i32, %c0_i32_0 : i32, i32
  }
  func.func @transform_7(%arg0: i32) -> (i32, i32) {
    %c0_i32 = arith.constant 0 : i32
    %c0_i32_0 = arith.constant 0 : i32
    %c0_i32_1 = arith.constant 0 : i32
    return %c0_i32, %c0_i32_0 : i32, i32
  }
  func.func @transform_8(%arg0: i32) -> (i32, i32) {
    %c0_i32 = arith.constant 0 : i32
    %c0_i32_0 = arith.constant 0 : i32
    %c0_i32_1 = arith.constant 0 : i32
    return %c0_i32, %c0_i32_0 : i32, i32
  }
  func.func @transform_9(%arg0: i32) -> (i32, i32) {
    %c0_i32 = arith.constant 0 : i32
    %c0_i32_0 = arith.constant 0 : i32
    return %arg0, %c0_i32 : i32, i32
  }
}

</mosaic_0001>

<bundles_post_ra>
// kernel: tpu_custom_call.1
= control target key start
LH: loop header
LB: loop body
LE: loop exit
PB: predicated region body
PF: predicated region fallthrough
CT: control target
= control target key end

     0   :  { %s1177_s0 = inlined_call_operand.vmem [shape: f32[24,24], index: 0, kind: input, shape index: {}]   ;;  %s1178_s1 = inlined_call_operand.vmem [shape: f32[24,8], index: 1, kind: input, shape index: {}]   ;;  %s1179_s2 = inlined_call_operand.hbm [shape: f32[24,128], index: 2, kind: input, shape index: {}]   ;;  %s1180_s3 = inlined_call_operand.vmem [shape: f32[8,128], index: 3, kind: input, shape index: {}]   ;;  %s1181_s4 = inlined_call_operand.vmem [shape: f32[1,128], index: 4, kind: input, shape index: {}]   ;;  %s1182_s5 = inlined_call_operand.hbm [shape: f32[128,128], index: 5, kind: input, shape index: {}]   ;;  %s1183_s6 = inlined_call_operand.vmem [shape: f32[1,128], index: 6, kind: input, shape index: {}]   ;;  %s1184_s7 = inlined_call_operand.vmem [shape: f32[1,128], index: 7, kind: input, shape index: {}]   ;;  %s1185_s8 = inlined_call_operand.<no memory space> [shape: f32[1,1], index: 8, kind: input, shape index: {}]   ;;  %s1186_s9 = inlined_call_operand.vmem [shape: f32[24,1], index: 9, kind: output, shape index: {}]  }
   0x1   :  { %v14_v0 = vstv %s1185_s8 }
   0x2   :  { %15 = vst [vmem:[#allocation2] sm:$0x1] %v14_v0 }
   0x3   :  { %16 = vsyncpa [#allocation4], 0 }
   0x4   :  { %17 = vsyncpa [#allocation6], 0  ;;  %s1052_s11 = smov 0  }
   0x5 LB: > { %s1058_s12 = sadd.s32 4294967295, %s990_s11   ;;  %p765_p0 = scmp.ge.s32.totalorder %s990_s11, 1  ;;  %s990_s11 = sphi %s1052_s11, %s23_s11  }
   0x6   : > { %p253_p1 = scmp.lt.s32.totalorder %s990_s11, 4  ;;  %s992_s8 = smov [#allocation3]  }
   0x7   : > { %s265_s13 = sshll.u32 %s992_s8, 4  ;;  %p1187_p3 = scmp.eq.s32.totalorder %s1058_s12, 0  ;;  %s266_s13 = int_to_ptr.vmem [resolvable:$true] %s265_s13 }
   0x8   : > { %p1062_p2 = pnand %p765_p0, %p253_p1  ;;  %s993_s15 = smov [#allocation5]  }
   0x9   : > { %s284_s16 = sshll.u32 %s993_s15, 4  ;;  %s920_s20 = scalar_lea.hbm %s1179_s2, 384  ;;  %s1075_s16 = int_to_ptr.vmem [resolvable:$true] %s284_s16 }
   0xa   : > { %s1189_s14 = scalar_select %p1062_p2, 1, 0 }
   0xb   : > { %p890_p4 = pneg %p1062_p2  ;;  %p921_p6 = scmp.ne.s32.totalorder %s1179_s2, %s920_s20 }
   0xc   : > { %p927_p10 = scmp.lt.u32.totalorder %s920_s20, %s1179_s2 }
   0xd   : > { %p1071_p5 = pnand %p1187_p3, %p890_p4 }
   0xf   : > { %p922_p7 = pneg %p1071_p5 }
  0x11   : > { %p923_p8 = pnand %p922_p7, %p921_p6 }
  0x13   : > { %p924_p9 = pneg %p923_p8 }
  0x15   : > { %p929_p11 = pnand %p927_p10, %p924_p9 }
  0x17   : > { %932 = shalt.err (!%p929_p11)
}
  0x18   : > { %s933_s25 = scalar_lea.vmem %s266_s13, 384  ;;  %p941_p1 = scmp.lt.s32.totalorder %s266_s13, %s266_s13 }
  0x19   : > { %p934_p12 = scmp.ne.s32.totalorder %s266_s13, %s933_s25  ;;  %p942_p4 = scmp.lt.s32.totalorder %s933_s25, %s933_s25 }
  0x1b   : > { %p936_p13 = pnand %p934_p12, %p922_p7  ;;  %p943_p3 = por %p942_p4, %p941_p1 }
  0x1d   : > { %p937_p0 = pneg %p936_p13 }
  0x1f   : > { %p944_p2 = pnand %p943_p3, %p937_p0 }
  0x21   : > { %947 = shalt.err (!%p944_p2)
}
  0x22   : > { %s994_s26 = smov 128   ;;  %s995_s27 = smov 8  }
  0x23   : > { %893 = dma.hbm_to_vmem [thread:$0]  (!%p1071_p5), %s1179_s2, 384, %s266_s13, [#allocation4], %s994_s26, %s994_s26, %s995_s27  }
  0x24   : > { %s948_s8 = scalar_lea.hbm %s1182_s5, 2048 }
  0x25   : > { %p949_p6 = scmp.ne.s32.totalorder %s1182_s5, %s948_s8  ;;  %p955_p8 = scmp.lt.u32.totalorder %s948_s8, %s1182_s5 }
  0x27   : > { %p951_p2 = pnand %p949_p6, %p922_p7 }
  0x29   : > { %p952_p3 = pneg %p951_p2 }
  0x2b   : > { %p957_p9 = pnand %p955_p8, %p952_p3 }
  0x2d   : > { %960 = shalt.err (!%p957_p9)
}
  0x2e   : > { %s961_s13 = scalar_lea.vmem %s1075_s16, 2048  ;;  %p969_p13 = scmp.lt.s32.totalorder %s1075_s16, %s1075_s16 }
  0x2f   : > { %p962_p10 = scmp.ne.s32.totalorder %s1075_s16, %s961_s13  ;;  %p970_p0 = scmp.lt.s32.totalorder %s961_s13, %s961_s13 }
  0x31   : > { %p964_p11 = pnand %p962_p10, %p922_p7  ;;  %p971_p1 = por %p970_p0, %p969_p13 }
  0x33   : > { %p965_p12 = pneg %p964_p11 }
  0x35   : > { %p972_p4 = pnand %p971_p1, %p965_p12 }
  0x37   : > { %975 = shalt.err (!%p972_p4)
}
  0x38   : > { %896 = dma.hbm_to_vmem [thread:$0]  (!%p1071_p5), %s1182_s5, 2048, %s1075_s16, [#allocation6], %s994_s26, %s994_s26, %s995_s27  }
  0x39   : > { %p1191_p6 = scmp.ne.s32.totalorder %s1189_s14, 0 }
  0x3a   : > { %p1192_p2 = scmp.eq.s32.totalorder (!%p1191_p6), %s1058_s12, 0 }
  0x3b   : > { %323 = sbr.rel (%p1191_p6) target bundleno = 1277 (0x4fd), region = 56 }
  0x42   : > { %981 = dma.done.wait (%p1192_p2), [#allocation4], 384   ;;  %p1193_p7 = pmov %p1192_p2 }
  0x43   : > { %p1194_p3 = pmov %p1192_p2 }
  0x44   : > { %983 = vsyncadd (%p1193_p7), [#allocation4], 4294966912 }
  0x45   : > { %985 = dma.done.wait (%p1194_p3), [#allocation6], 2048   ;;  %p1195_p8 = pmov %p1192_p2 }
  0x46   : > { %p365_p9 = scmp.lt.s32.totalorder %s1058_s12, 2  ;;  %v996_v1 = vmov 0.0   ;;  %vm997_vm0 = vmmov 0   ;;  %v998_v2 = vmov 0.0|0.0   ;;  %vm383_vm1 = vcmask 64512   ;;  %v382_v3 = vld [vmem:[%s1180_s3] sm:$0xff] }
  0x47   : > { %987 = vsyncadd (%p1195_p8), [#allocation6], 4294965248  ;;  %806 = vmatprep.subr.mxu1 %v996_v1  ;;  %808 = vmatprep.mubr.msk.f32.mxu1 %vm997_vm0, %v996_v1  ;;  %v378_v5 = vld [vmem:[#allocation3] sm:$0xff]  ;;  %v379_v6 = vld [vmem:[#allocation3 + $0x8] sm:$0xff]  ;;  %vm457_vm2 = vcmask 195584   ;;  %vm674_vm3 = vcmask 7168  }
  0x48   : > { %s1197_s12 = smov (!%p365_p9, %s1058_s12), 2  ;;  %858 = vmatprep.subr.bf16.mxu0 %v998_v2  ;;  %852 = vmatprep.mubr.msk.f32.mxu0 %vm997_vm0, %v996_v1  ;;  %v856_v7 = vpack.c.bf16 %v379_v6, %v378_v5  ;;  %v380_v8 = vld [vmem:[#allocation3 + $0x10] sm:$0xff]  ;;  %v777_v13 = vld [vmem:[%s1181_s4] ss:$0 sm:$0xff]  ;;  %v552_v19 = vld [vmem:[#allocation5 + $0x8] sm:$0xff] }
  0x49   : > { %s1139_s14 = sshll.u32 %s1197_s12, 3  ;;  %807 = vmatpush3.msra.mxu1 %v382_v3  ;;  %v551_v18 = vld [vmem:[#allocation5] sm:$0xff]  ;;  %v553_v20 = vld [vmem:[#allocation5 + $0x10] sm:$0xff]  ;;  %v554_v22 = vld [vmem:[#allocation5 + $0x18] sm:$0xff] }
  0x4a   : > { %s372_s23 = scalar_lea.vmem %s1178_s1, %s1139_s14  ;;  %855 = vmatprep.subr.bf16.mxu1 %v998_v2  ;;  %s368_s27 = scalar_lea.vmem %s1177_s0, %s1139_s14  ;;  %v859_v21 = vpack.c.bf16 %v552_v19, %v551_v18  ;;  %v862_v23 = vpack.c.bf16 %v554_v22, %v553_v20  ;;  %v555_v24 = vld [vmem:[#allocation5 + $0x20] sm:$0xff]  ;;  %v556_v25 = vld [vmem:[#allocation5 + $0x28] sm:$0xff]  ;;  %v557_v27 = vld [vmem:[#allocation5 + $0x30] sm:$0xff] }
  0x4b   : > { %v381_v4 = vld [vmem:[%s372_s23] sm:$0xff]  ;;  %v865_v26 = vpack.c.bf16 %v556_v25, %v555_v24  ;;  %v558_v28 = vld [vmem:[#allocation5 + $0x38] sm:$0xff]  ;;  %v561_v37 = vld [vmem:[#allocation5 + $0x50] sm:$0xff]  ;;  %s376_s20 = scalar_lea.vmem %s1186_s9, %s1139_s14 }
  0x4c   : > { %809 = vmatmul.mubr.msk.f32.vlgmr.msra.gmra.mrb[0].mxu1 %vm383_vm1, %v381_v4  ;;  %v377_v9 = vld [vmem:[%s368_s27] sm:$0xff]  ;;  %860 = vmatpush3.bf16.msra.mxu0 %v859_v21  ;;  %v868_v29 = vpack.c.bf16 %v558_v28, %v557_v27  ;;  %v562_v38 = vld [vmem:[#allocation5 + $0x58] sm:$0xff]  ;;  %v565_v43 = vld [vmem:[#allocation5 + $0x70] sm:$0xff] }
  0x4d   : > { %817 = vmatprep.mubr.msk.f32.mxu1 %vm997_vm0, %v996_v1  ;;  %857 = vmatpush3.bf16.msra.mxu1 %v856_v7  ;;  %v559_v34 = vld [vmem:[#allocation5 + $0x40] sm:$0xff]  ;;  %v560_v35 = vld [vmem:[#allocation5 + $0x48] sm:$0xff]  ;;  %v874_v39 = vpack.c.bf16 %v562_v38, %v561_v37  ;;  %v566_v44 = vld [vmem:[#allocation5 + $0x78] sm:$0xff] }
  0x4e   : > { %815 = vmatprep.subr.mxu1 %v996_v1  ;;  %861 = vmatprep.subr.bf16.mxu0 %v998_v2  ;;  %v871_v36 = vpack.c.bf16 %v560_v35, %v559_v34  ;;  %v563_v40 = vld [vmem:[#allocation5 + $0x60] sm:$0xff]  ;;  %v564_v41 = vld [vmem:[#allocation5 + $0x68] sm:$0xff]  ;;  %v880_v45 = vpack.c.bf16 %v566_v44, %v565_v43 }
  0x4f   : > { %v877_v42 = vpack.c.bf16 %v564_v41, %v563_v40  ;;  %v778_v51 = vld [vmem:[%s1183_s6] ss:$0 sm:$0xff] }
  0x50   : > { %863 = vmatpush3.bf16.msra.mxu0 %v862_v23  ;;  %v779_v0 = vld [vmem:[%s1184_s7] ss:$0 sm:$0xff] }
  0x51   : > { %816 = vmatpush3.msra.mxu1 %v380_v8  ;;  %864 = vmatprep.subr.bf16.mxu0 %v998_v2  ;;  %v780_v3 = vld [vmem:[#allocation2] ss:$0 sm:$0xff] }
  0x52   : > { %818 = vmatmul.mubr.msk.f32.vlgmr.msra.gmra.mrb[2].mxu1 %vm457_vm2, %v377_v9 }
  0x54   : > { %866 = vmatpush3.bf16.msra.mxu0 %v865_v26 }
  0x55   : > { %867 = vmatprep.subr.bf16.mxu0 %v998_v2 }
  0x58   : > { %869 = vmatpush3.bf16.msra.mxu0 %v868_v29 }
  0x59   : > { %870 = vmatprep.subr.bf16.mxu0 %v998_v2 }
  0x5c   : > { %872 = vmatpush3.bf16.msra.mxu0 %v871_v36 }
  0x5d   : > { %873 = vmatprep.subr.bf16.mxu0 %v998_v2 }
  0x60   : > { %875 = vmatpush3.bf16.msra.mxu0 %v874_v39 }
  0x61   : > { %876 = vmatprep.subr.bf16.mxu0 %v998_v2 }
  0x64   : > { %878 = vmatpush3.bf16.msra.mxu0 %v877_v42 }
  0x65   : > { %879 = vmatprep.subr.bf16.mxu0 %v998_v2 }
  0x68   : > { %881 = vmatpush3.bf16.msra.mxu0 %v880_v45 }
 0x11f   : > { %v453_v10 = vpop.f32.mrb[0].mxu1 }
 0x120   : > { %v810_v11 = vpop.f32.mrb[1].mxu1 }
 0x125   : > { %v527_v12 = vpop.f32.mrb[2].mxu1 }
 0x126   : > { %v528_v14 = vadd.f32 %v527_v12, %v453_v10  ;;  %v819_v15 = vpop.f32.mrb[3].mxu1 }
 0x128   : > { %v538_v16 = vadd.f32 %v777_v13, %v528_v14 }
 0x12a   : > { %v539_v17 = vmax.f32 %v538_v16, 0.0 }
 0x12c   : > { %540 = vadd.xlane.f32.xlu0 %v539_v17 }
 0x1b9   : > { %v541_v30 = vpop.xlane.xlu0 %540 }
 0x1ba   : > { %v542_v31 = vmul.f32 0.0078125, %v541_v30 }
 0x1bc   : > { %v543_v32 = vsub.f32 %v539_v17, %v542_v31 }
 0x1be   : > { %v544_v33 = vmul.f32 %v543_v32, %v543_v32 }
 0x1c0   : > { %545 = vadd.xlane.f32.xlu0 %v544_v33 }
 0x24d   : > { %v546_v46 = vpop.xlane.xlu0 %545 }
 0x24e   : > { %v547_v47 = vmul.f32 0.0078125, %v546_v46 }
 0x250   : > { %v548_v48 = vadd.f32 1e-05, %v547_v47 }
 0x252   : > { %916 = vrsqrt.f32 %v548_v48 }
 0x25c   : > { %v917_v49 = vpop.eup %916 }
 0x25d   : > { %v550_v50 = vmul.f32 %v917_v49, %v543_v32 }
 0x25f   : > { %853 = vmatmul.mubr.f32.vlgmr.msra.gmra.mrb[0].mxu0 %v550_v50 }
 0x332   : > { %v640_v52 = vpop.f32.mrb[0].mxu0 }
 0x333   : > { %v641_v53 = vadd.f32 %v778_v51, %v640_v52  ;;  %v854_v54 = vpop.f32.mrb[1].mxu0 }
 0x335   : > { %v644_v55 = vmax.f32 %v641_v53, 0.0 }
 0x337   : > { %645 = vadd.xlane.f32.xlu1 %v644_v55 }
 0x3c4   : > { %v646_v56 = vpop.xlane.xlu1 %645 }
 0x3c5   : > { %v647_v57 = vmul.f32 0.0078125, %v646_v56 }
 0x3c7   : > { %v648_v58 = vsub.f32 %v644_v55, %v647_v57 }
 0x3c9   : > { %v649_v59 = vmul.f32 %v648_v58, %v648_v58 }
 0x3cb   : > { %650 = vadd.xlane.f32.xlu1 %v649_v59 }
 0x458   : > { %v651_v60 = vpop.xlane.xlu1 %650 }
 0x459   : > { %v652_v61 = vmul.f32 0.0078125, %v651_v60 }
 0x45b   : > { %v653_v62 = vadd.f32 1e-05, %v652_v61 }
 0x45d   : > { %918 = vrsqrt.f32 %v653_v62 }
 0x467   : > { %v919_v63 = vpop.eup %918 }
 0x468   : > { %v655_v1 = vmul.f32 %v919_v63, %v648_v58 }
 0x46a   : > { %v663_v2 = vmul.f32 %v779_v0, %v655_v1 }
 0x46c   : > { %664 = vadd.xlane.f32.xlu0 %v663_v2 }
 0x4f9   : > { %v665_v4 = vpop.xlane.xlu0 %664 }
 0x4fa   : > { %v673_v5 = vadd.f32 %v780_v3, %v665_v4 }
 0x4fc   : > { %675 = vst.msk [vmem:[%s376_s20] sm:$0xff] %vm674_vm3, %v673_v5 }
 0x4fd PF: > { %s23_s11 = sadd.s32 1, %s990_s11  }
 0x4fe   : > { %p20_p5 = scmp.ge.s32.totalorder %s23_s11, 5  }
 0x500   :  { %22 = sbr.rel (!%p20_p5) target bundleno = 5 (0x5), region = 98 }
 0x507   :  { %695 = vsyncpa [#allocation4], 1 }
 0x508   :  { %697 = vsyncpa [#allocation4 + $0x1], 1 }
 0x509   :  { %698 = vsyncpa [#allocation6], 1 }

</bundles_post_ra>
